<compile_context>
chip_gen: v7x
topology: tpu7x:2x2x1
jax: 0.10.0
libtpu: 0.0.40
codegen_flags: <defaults>
</compile_context>

<pallas_src>
import jax
import jax.numpy as jnp
from jax import lax
from jax.experimental import pallas as pl
from jax.experimental.pallas import tpu as pltpu


def _round_up(x: int, m: int) -> int:
    return ((x + m - 1) // m) * m


def _permute_bmm_kernel(x1_ref, x2_ref, o_ref, acc_ref):
    # x1_ref: (tk, tm), x2_ref: (tk, tn), o_ref: (tm, tn), acc_ref: (tm, tn) f32
    k = pl.program_id(3)

    @pl.when(k == 0)
    def _():
        acc_ref[...] = jnp.zeros_like(acc_ref)

    a = x1_ref[...]  # (tk, tm)
    b = x2_ref[...]  # (tk, tn)
    # out_tile += a^T @ b — contract over K (axis 0 of both), fusing the
    # permute; MXU handles the transposed-LHS contraction natively.
    acc_ref[...] += lax.dot_general(
        a, b,
        dimension_numbers=(((0,), (0,)), ((), ())),
        preferred_element_type=jnp.float32,
    )

    @pl.when(k == pl.num_programs(3) - 1)
    def _():
        o_ref[...] = acc_ref[...].astype(o_ref.dtype)


def permute_bmm(x1, x2, *, tm=256, tn=256, tk=512):
    """Computes bmm(x1.transpose(0, 2, 1), x2) with a tiled Pallas TPU kernel.

    x1: (B, K, M), x2: (B, K, N) -> (B, M, N)
    """
    B, K, M = x1.shape
    B2, K2, N = x2.shape
    assert B == B2 and K == K2, "batch / contraction dims must match"

    out_dtype = jnp.result_type(x1.dtype, x2.dtype)

    # Effective tile sizes: keep block dims lane/sublane aligned
    # (tm, tn multiples of 128 since they are lane dims of x1 / x2+out blocks,
    #  tk multiple of 8 since it is the sublane dim of the input blocks),
    # but never larger than the padded problem size.
    tm_eff = min(tm, _round_up(M, 128))
    tn_eff = min(tn, _round_up(N, 128))
    tk_eff = min(tk, _round_up(K, 8))

    Mp = _round_up(M, tm_eff)
    Np = _round_up(N, tn_eff)
    Kp = _round_up(K, tk_eff)

    # Zero-pad ragged dims (zero padding along K contributes nothing to the
    # contraction; padded M/N rows/cols are sliced away afterwards).
    if (Kp, Mp) != (K, M):
        x1 = jnp.pad(x1, ((0, 0), (0, Kp - K), (0, Mp - M)))
    if (Kp, Np) != (K, N):
        x2 = jnp.pad(x2, ((0, 0), (0, Kp - K), (0, Np - N)))

    grid = (B, Mp // tm_eff, Np // tn_eff, Kp // tk_eff)

    elem = jnp.dtype(out_dtype).itemsize
    cost = pl.CostEstimate(
        flops=2 * B * Mp * Np * Kp,
        transcendentals=0,
        bytes_accessed=elem * (B * Kp * Mp + B * Kp * Np + B * Mp * Np),
    )

    out = pl.pallas_call(
        _permute_bmm_kernel,
        out_shape=jax.ShapeDtypeStruct((B, Mp, Np), out_dtype),
        grid_spec=pltpu.PrefetchScalarGridSpec(
            num_scalar_prefetch=0,
            grid=grid,
            in_specs=[
                # x1 tile: (K, M) -> (tk, tm), batch squeezed
                pl.BlockSpec((pl.Squeezed(), tk_eff, tm_eff),
                             lambda b, i, j, k: (b, k, i)),
                # x2 tile: (K, N) -> (tk, tn), batch squeezed
                pl.BlockSpec((pl.Squeezed(), tk_eff, tn_eff),
                             lambda b, i, j, k: (b, k, j)),
            ],
            # output tile revisited across the K axis (accumulator pattern)
            out_specs=pl.BlockSpec((pl.Squeezed(), tm_eff, tn_eff),
                                   lambda b, i, j, k: (b, i, j)),
            scratch_shapes=[pltpu.VMEM((tm_eff, tn_eff), jnp.float32)],
        ),
        compiler_params=pltpu.CompilerParams(
            dimension_semantics=("parallel", "parallel", "parallel", "arbitrary"),
        ),
        cost_estimate=cost,
    )(x1, x2)

    if (Mp, Np) != (M, N):
        out = out[:, :M, :N]
    return out


if __name__ == "__main__":
    key = jax.random.PRNGKey(0)
    k1, k2 = jax.random.split(key)

    # Small shapes consistent with the module's (B, K, M) x (B, K, N) bmm.
    B, K, M, N = 2, 8, 16, 32
    x1 = jax.random.normal(k1, (B, K, M), dtype=jnp.float32)
    x2 = jax.random.normal(k2, (B, K, N), dtype=jnp.float32)

    out = permute_bmm(x1, x2)
    out = jax.block_until_ready(out)

    # Reference check (plain JAX): bmm(permute(x1, (0, 2, 1)), x2)
    ref = jnp.einsum("bkm,bkn->bmn", x1, x2)
    assert out.shape == (B, M, N)
    assert jnp.allclose(out, ref, atol=1e-5, rtol=1e-5), "mismatch vs reference"

    print("KERNEL_OK")
</pallas_src>

<mosaic_0001>
module attributes {stable_mosaic.version = 11 : i64} {
  func.func @_permute_bmm_kernel(%arg0: i32, %arg1: i32, %arg2: i32, %arg3: i32, %arg4: memref<1x8x128xf32, #tpu.memory_space<vmem>>, %arg5: memref<1x8x128xf32, #tpu.memory_space<vmem>>, %arg6: memref<1x128x128xf32, #tpu.memory_space<vmem>>, %arg7: memref<128x128xf32, #tpu.memory_space<vmem>>) attributes {dimension_semantics = [#tpu.dimension_semantics<parallel>, #tpu.dimension_semantics<parallel>, #tpu.dimension_semantics<parallel>, #tpu.dimension_semantics<arbitrary>], iteration_bounds = array<i64: 2, 1, 1, 1>, scalar_prefetch = 0 : i64, scratch_operands = 1 : i64, tpu.core_type = #tpu.core_type<tc>, window_params = [{transform_indices = @transform_0, window_bounds = array<i64: 1, 8, 128>}, {transform_indices = @transform_1, window_bounds = array<i64: 1, 8, 128>}, {transform_indices = @transform_2, window_bounds = array<i64: 1, 128, 128>}]} {
    %c0_i32 = arith.constant 0 : i32
    %0 = arith.cmpi eq, %arg3, %c0_i32 : i32
    %1 = arith.extui %0 : i1 to i32
    %c0_i32_0 = arith.constant 0 : i32
    %2 = arith.cmpi ne, %1, %c0_i32_0 : i32
    scf.if %2 {
      %cst_12 = arith.constant 0.000000e+00 : f32
      %14 = vector.broadcast %cst_12 : f32 to vector<128x128xf32>
      %c0_13 = arith.constant 0 : index
      %c0_14 = arith.constant 0 : index
      %15 = vector.load %arg7[%c0_13, %c0_14] : memref<128x128xf32, #tpu.memory_space<vmem>>, vector<128x128xf32>
      tpu.vector_store %arg7[%c0_13, %c0_14], %14 {strides = array<i32>} : memref<128x128xf32, #tpu.memory_space<vmem>>, vector<128x128xf32>,
    } else {
    }
    %c0 = arith.constant 0 : index
    %c0_1 = arith.constant 0 : index
    %c0_2 = arith.constant 0 : index
    %3 = vector.load %arg4[%c0, %c0_1, %c0_2] : memref<1x8x128xf32, #tpu.memory_space<vmem>>, vector<1x8x128xf32>
    %4 = vector.shape_cast %3 : vector<1x8x128xf32> to vector<8x128xf32>
    %c0_3 = arith.constant 0 : index
    %c0_4 = arith.constant 0 : index
    %c0_5 = arith.constant 0 : index
    %5 = vector.load %arg5[%c0_3, %c0_4, %c0_5] : memref<1x8x128xf32, #tpu.memory_space<vmem>>, vector<1x8x128xf32>
    %6 = vector.shape_cast %5 : vector<1x8x128xf32> to vector<8x128xf32>
    %c0_6 = arith.constant 0 : index
    %c0_7 = arith.constant 0 : index
    %7 = vector.load %arg7[%c0_6, %c0_7] : memref<128x128xf32, #tpu.memory_space<vmem>>, vector<128x128xf32>
    %cst = arith.constant dense<0.000000e+00> : vector<128x128xf32>
    %8 = tpu.matmul %4, %6, %cst {dimension_numbers = #tpu.dot_dimension_numbers<[0], [0], [1], [1], [0, 1, 1, 1], [], []>} : vector<8x128xf32>, vector<8x128xf32>, vector<128x128xf32> -> vector<128x128xf32>
    %9 = arith.addf %7, %8 : vector<128x128xf32>
    %c0_8 = arith.constant 0 : index
    %c0_9 = arith.constant 0 : index
    %10 = vector.load %arg7[%c0_8, %c0_9] : memref<128x128xf32, #tpu.memory_space<vmem>>, vector<128x128xf32>
    tpu.vector_store %arg7[%c0_8, %c0_9], %9 {strides = array<i32>} : memref<128x128xf32, #tpu.memory_space<vmem>>, vector<128x128xf32>,
    %c0_i32_10 = arith.constant 0 : i32
    %11 = arith.cmpi eq, %arg3, %c0_i32_10 : i32
    %12 = arith.extui %11 : i1 to i32
    %c0_i32_11 = arith.constant 0 : i32
    %13 = arith.cmpi ne, %12, %c0_i32_11 : i32
    scf.if %13 {
      %c0_12 = arith.constant 0 : index
      %c0_13 = arith.constant 0 : index
      %14 = vector.load %arg7[%c0_12, %c0_13] : memref<128x128xf32, #tpu.memory_space<vmem>>, vector<128x128xf32>
      %c0_14 = arith.constant 0 : index
      %c0_15 = arith.constant 0 : index
      %c0_16 = arith.constant 0 : index
      %15 = vector.load %arg6[%c0_14, %c0_15, %c0_16] : memref<1x128x128xf32, #tpu.memory_space<vmem>>, vector<1x128x128xf32>
      %16 = vector.shape_cast %15 : vector<1x128x128xf32> to vector<128x128xf32>
      %17 = vector.shape_cast %14 : vector<128x128xf32> to vector<1x128x128xf32>
      tpu.vector_store %arg6[%c0_14, %c0_15, %c0_16], %17 {strides = array<i32>} : memref<1x128x128xf32, #tpu.memory_space<vmem>>, vector<1x128x128xf32>,
    } else {
    }
    return
  }
  func.func @transform_0(%arg0: i32, %arg1: i32, %arg2: i32, %arg3: i32) -> (i32, i32, i32) {
    %c0_i32 = arith.constant 0 : i32
    return %arg0, %arg3, %arg1 : i32, i32, i32
  }
  func.func @transform_1(%arg0: i32, %arg1: i32, %arg2: i32, %arg3: i32) -> (i32, i32, i32) {
    %c0_i32 = arith.constant 0 : i32
    return %arg0, %arg3, %arg2 : i32, i32, i32
  }
  func.func @transform_2(%arg0: i32, %arg1: i32, %arg2: i32, %arg3: i32) -> (i32, i32, i32) {
    %c0_i32 = arith.constant 0 : i32
    return %arg0, %arg1, %arg2 : i32, i32, i32
  }
}

</mosaic_0001>

<bundles_post_ra>
// kernel: tpu_custom_call.1
= control target key start
LH: loop header
LB: loop body
LE: loop exit
PB: predicated region body
PF: predicated region fallthrough
CT: control target
= control target key end

     0   :  { %7 = vsyncpa [#allocation4], 0  ;;  %s1280_s0 = inlined_call_operand.hbm [shape: f32[2,8,128], index: 0, kind: input, shape index: {}]   ;;  %s1281_s1 = inlined_call_operand.hbm [shape: f32[2,8,128], index: 1, kind: input, shape index: {}]   ;;  %s1282_s2 = inlined_call_operand.hbm [shape: f32[2,128,128], index: 2, kind: output, shape index: {}]  }
   0x1   :  { %9 = vsyncpa [#allocation4 + $0x1], 0 }
   0x2   :  { %10 = vsyncpa [#allocation7], 0 }
   0x3   :  { %12 = vsyncpa [#allocation7 + $0x1], 0 }
   0x4   :  { %13 = vsyncpa [#allocation5], 0 }
   0x5   :  { %15 = vsyncpa [#allocation5 + $0x1], 0  ;;  %s1022_s9 = smov 0   ;;  %s1024_s10 = smov 0  }
   0x6   :  { %s1026_s11 = smov 0   ;;  %s1028_s12 = smov 0  }
   0x7   :  { %s1030_s13 = smov 0   ;;  %s1032_s14 = smov 0  }
   0x8 LB: > { %s705_s15 = sadd.s32 4294967295, %s1000_s14   ;;  %s706_s16 = sadd.s32 4294967294, %s1000_s14   ;;  %s1000_s14 = sphi %s1032_s14, %s21_s14   ;;  %s996_s13 = sphi %s1030_s13, %s1302_s13   ;;  %s992_s12 = sphi %s1028_s12, %s1301_s12   ;;  %s988_s11 = sphi %s1026_s11, %s1300_s11   ;;  %s984_s10 = sphi %s1024_s10, %s1299_s10   ;;  %s980_s9 = sphi %s1022_s9, %s1298_s9  }
   0x9   : > { %s47_s17 = sadd.s32 1, %s996_s13  ;;  %s58_s18 = sadd.s32 1, %s988_s11 }
   0xa   : > { %p49_p0 = scmp.ge.s32.totalorder %s47_s17, 2  ;;  %p65_p1 = scmp.ne.s32.totalorder %s988_s11, %s984_s10 }
   0xb   : > { %p66_p2 = scmp.eq.s32.totalorder %s1000_s14, 0  ;;  %p71_p3 = scmp.ne.s32.totalorder %s984_s10, %s980_s9 }
   0xc   : > { %s1304_s17 = smov (%p49_p0, %s47_s17), 0  ;;  %p72_p5 = scmp.eq.s32.totalorder %s705_s15, 0 }
   0xd   : > { %p1063_p4 = por %p66_p2, %p65_p1  ;;  %s51_s20 = ssub.s32 %s996_s13, %s1304_s17 }
   0xe   : > { %p129_p6 = scmp.eq.s32.totalorder %s705_s15, 1  ;;  %p56_p7 = scmp.eq.s32.totalorder %s51_s20, 0 }
   0xf   : > { %p1069_p8 = por %p72_p5, %p71_p3  ;;  %p135_p10 = scmp.eq.s32.totalorder %s706_s16, 1 }
  0x10   : > { %p1073_p9 = por %p129_p6, %p65_p1  ;;  %p801_p13 = scmp.lt.s32.totalorder %s1000_s14, 2 }
  0x11   : > { %s1286_s21 = scalar_select %p1069_p8, 1, 0 }
  0x12   : > { %s1287_s22 = scalar_select %p1073_p9, 1, 0 }
  0x13   : > { %s1078_s23 = scalar_select %p56_p7, %s988_s11, %s58_s18  }
  0x14   : > { %p1080_p11 = por %p135_p10, %p71_p3  ;;  %s1087_s25 = sand.u32 1, %s988_s11  }
  0x15   : > { %s709_s26 = sshll.u32 %s1087_s25, 3  ;;  %s710_s27 = sshll.u32 %s996_s13, 7 }
  0x16   : > { %s1288_s24 = scalar_select %p1080_p11, 1, 0 }
  0x17   : > { %s1096_s30 = scalar_lea.hbm %s1280_s0, %s710_s27  ;;  %s159_s3 = scalar_lea.vmem [#allocation3], %s709_s26 }
  0x18   : > { %s168_s4 = sshll.u32 %s159_s3, 4  ;;  %p1104_p0 = pnand %p801_p13, %p1063_p4  ;;  %s1100_s4 = int_to_ptr.vmem [resolvable:$true] %s168_s4 }
  0x19   : > { %s156_s6 = scalar_lea.sflag [#allocation4], %s1087_s25  ;;  %s854_s7 = scalar_lea.hbm %s1096_s30, 128 }
  0x1a   : > { %p855_p3 = scmp.ne.s32.totalorder %s1096_s30, %s854_s7  ;;  %p856_p5 = pneg %p1104_p0 }
  0x1b   : > { %s859_s16 = scalar_lea.hbm %s1280_s0, 256  ;;  %p860_p4 = scmp.lt.u32.totalorder %s1096_s30, %s1280_s0 }
  0x1c   : > { %p857_p6 = pnand %p856_p5, %p855_p3  ;;  %p861_p10 = scmp.lt.u32.totalorder %s859_s16, %s854_s7 }
  0x1d   : > { %p863_p12 = scmp.lt.u32.totalorder %s854_s7, %s1096_s30 }
  0x1e   : > { %p858_p7 = pneg %p857_p6  ;;  %p862_p13 = por %p861_p10, %p860_p4 }
  0x20   : > { %p864_p1 = por %p863_p12, %p862_p13 }
  0x22   : > { %p865_p2 = pnand %p864_p1, %p858_p7 }
  0x24   : > { %868 = shalt.err (!%p865_p2)
}
  0x25   : > { %s869_s20 = scalar_lea.vmem %s1100_s4, 128  ;;  %s1002_s28 = smov [#allocation3]  }
  0x26   : > { %p870_p3 = scmp.ne.s32.totalorder %s1100_s4, %s869_s20  ;;  %s874_s29 = sshll.u32 %s1002_s28, 4  ;;  %s875_s29 = int_to_ptr.vmem [resolvable:$false] %s874_s29 }
  0x27   : > { %s876_s3 = scalar_lea.vmem %s875_s29, 256  ;;  %p877_p9 = scmp.lt.s32.totalorder %s1100_s4, %s875_s29 }
  0x28   : > { %p872_p6 = pnand %p870_p3, %p856_p5  ;;  %p878_p4 = scmp.lt.s32.totalorder %s876_s3, %s869_s20 }
  0x2a   : > { %p873_p11 = pneg %p872_p6  ;;  %p879_p10 = por %p878_p4, %p877_p9 }
  0x2c   : > { %p880_p12 = pnand %p879_p10, %p873_p11 }
  0x2e   : > { %883 = shalt.err (!%p880_p12)
}
  0x2f   : > { %793 = dma.hbm_to_vmem [thread:$0]  (!%p1104_p0), %s1096_s30, 128, %s1100_s4, %s156_s6  }
  0x30   : > { %p1290_p1 = scmp.lt.s32.totalorder %s1000_s14, 3  ;;  %p1291_p2 = scmp.ge.s32.totalorder %s1000_s14, 1 }
  0x31   : > { %s1149_s16 = scalar_lea.hbm %s1281_s1, %s710_s27  ;;  %s179_s18 = scalar_lea.vmem [#allocation6], %s709_s26 }
  0x32   : > { %p1140_p7 = pnand %p1291_p2, %p1290_p1  ;;  %s188_s19 = sshll.u32 %s179_s18, 4  ;;  %s189_s19 = int_to_ptr.vmem [resolvable:$true] %s188_s19 }
  0x33   : > { %s176_s30 = scalar_lea.sflag [#allocation7], %s1087_s25  ;;  %s884_s4 = scalar_lea.hbm %s1149_s16, 128 }
  0x34   : > { %s1292_s7 = scalar_select %p1140_p7, 1, 0 }
  0x35   : > { %p885_p9 = scmp.ne.s32.totalorder %s1149_s16, %s884_s4  ;;  %s889_s27 = scalar_lea.hbm %s1281_s1, 256 }
  0x36   : > { %p890_p3 = scmp.lt.u32.totalorder %s1149_s16, %s1281_s1  ;;  %p891_p6 = scmp.lt.u32.totalorder %s889_s27, %s884_s4 }
  0x37   : > { %p887_p11 = pnand %p885_p9, %p856_p5  ;;  %p893_p10 = scmp.lt.u32.totalorder %s884_s4, %s1149_s16 }
  0x38   : > { %p892_p4 = por %p891_p6, %p890_p3 }
  0x39   : > { %p888_p13 = pneg %p887_p11 }
  0x3a   : > { %p894_p12 = por %p893_p10, %p892_p4 }
  0x3c   : > { %p895_p1 = pnand %p894_p12, %p888_p13 }
  0x3e   : > { %898 = shalt.err (!%p895_p1)
}
  0x3f   : > { %s899_s25 = scalar_lea.vmem %s189_s19, 128  ;;  %s1003_s26 = smov [#allocation6]  }
  0x40   : > { %p900_p2 = scmp.ne.s32.totalorder %s189_s19, %s899_s25  ;;  %s904_s3 = sshll.u32 %s1003_s26, 4  ;;  %s905_s3 = int_to_ptr.vmem [resolvable:$false] %s904_s3 }
  0x41   : > { %s906_s8 = scalar_lea.vmem %s905_s3, 256  ;;  %p907_p8 = scmp.lt.s32.totalorder %s189_s19, %s905_s3 }
  0x42   : > { %p902_p9 = pnand %p900_p2, %p856_p5  ;;  %p908_p7 = scmp.lt.s32.totalorder %s906_s8, %s899_s25 }
  0x44   : > { %p903_p11 = pneg %p902_p9  ;;  %p909_p3 = por %p908_p7, %p907_p8 }
  0x46   : > { %p910_p6 = pnand %p909_p3, %p903_p11 }
  0x48   : > { %913 = shalt.err (!%p910_p6)
}
  0x49   : > { %796 = dma.hbm_to_vmem [thread:$0]  (!%p1104_p0), %s1149_s16, 128, %s189_s19, %s176_s30  }
  0x4a   : > { %p1293_p13 = scmp.ne.s32.totalorder %s1292_s7, 0 }
  0x4b   : > { %s1176_s15 = sand.u32 (!%p1293_p13), 1, %s984_s10   ;;  %p1294_p5 = scmp.ne.s32.totalorder (!%p1293_p13), %s1286_s21, 0 }
  0x4c   : > { %197 = sbr.rel (%p1293_p13) target bundleno = 504 (0x1f8), region = 28  ;;  %s714_s18 = sshll.u32 (!%p1293_p13), %s1176_s15, 3 }
  0x4d   : > { %s200_s4 = scalar_lea.sflag (!%p1293_p13), [#allocation4], %s1176_s15  ;;  %s203_s6 = scalar_lea.vmem (!%p1293_p13), [#allocation3], %s714_s18 }
  0x53   : > { %967 = dma.done.wait (%p1294_p5), %s200_s4, 128  }
  0x54   : > { %969 = vsyncadd (%p1294_p5), %s200_s4, 4294967168  ;;  %s209_s5 = scalar_lea.sflag [#allocation7], %s1176_s15  ;;  %s212_s16 = scalar_lea.vmem [#allocation6], %s714_s18 }
  0x55   : > { %971 = dma.done.wait (%p1294_p5), %s209_s5, 128  }
  0x56   : > { %973 = vsyncadd (%p1294_p5), %s209_s5, 4294967168  ;;  %v259_v0 = vld [vmem:[%s203_s6] sm:$0xff]  ;;  %v260_v1 = vld [vmem:[%s212_s16] sm:$0xff]  ;;  %vm309_vm0 = vcmask 64512   ;;  %s716_s21 = sshll.u32 %s1176_s15, 7  ;;  %s738_s19 = sshll.u32 %s992_s12, 11 }
  0x57   : > { %277 = vxpose.xlu0.b32.start.end [1/1] (short) %v259_v0, 128  ;;  %756 = vmatprep.subr.mxu0 %v260_v1  ;;  %s1206_s7 = scalar_lea.vmem [#allocation8], %s716_s21  ;;  %s1227_s28 = scalar_lea.hbm %s1282_s2, %s738_s19 }
  0x58   : > { %782 = vmatprep.subr.mxu1 %v260_v1  ;;  %757 = vmatpush3.msra.mxu0 %v260_v1  ;;  %s587_s30 = sshll.u32 %s1206_s7, 4  ;;  %s571_s29 = scalar_lea.sflag [#allocation5], %s1176_s15  ;;  %s1229_s30 = int_to_ptr.vmem [resolvable:$true] %s587_s30 }
  0x59   : > { %783 = vmatpush3.msra.mxu1 %v260_v1  ;;  %s914_s25 = scalar_lea.vmem %s1229_s30, 2048  ;;  %p1295_p0 = scmp.ne.s32.totalorder %s1287_s22, 0 }
  0x5a   : > { %p915_p8 = scmp.ne.s32.totalorder %s1229_s30, %s914_s25  ;;  %s1004_s12 = smov [#allocation8]  }
  0x5b   : > { %s918_s26 = sshll.u32 %s1004_s12, 4  ;;  %s919_s26 = int_to_ptr.vmem [resolvable:$false] %s918_s26 }
  0x5c   : > { %p916_p7 = pnand %p915_p8, %p1295_p0  ;;  %s920_s3 = scalar_lea.vmem %s919_s26, 4096 }
  0x5d   : > { %p921_p10 = scmp.lt.s32.totalorder %s1229_s30, %s919_s26  ;;  %p922_p12 = scmp.lt.s32.totalorder %s920_s3, %s914_s25 }
  0x5e   : > { %p917_p4 = pneg %p916_p7 }
  0x5f   : > { %p923_p1 = por %p922_p12, %p921_p10 }
  0x61   : > { %p924_p2 = pnand %p923_p1, %p917_p4 }
  0xd7   : > { %v293_v2 = vpop.trf.xlu0 }
  0xd8   : > { %758 = vmatprep.mubr.msk.f32.mxu0 %vm309_vm0, %v293_v2 }
  0xdb   : > { %v294_v3 = vpop.trf.xlu0 }
  0xdc   : > { %759 = vmatmul.mubr.msk.f32.vlgmr.msra.gmra.mrb[0].mxu0 %vm309_vm0, %v294_v3 }
  0xdf   : > { %v295_v4 = vpop.trf.xlu0 }
  0xe0   : > { %761 = vmatprep.mubr.msk.f32.mxu0 %vm309_vm0, %v295_v4 }
  0xe3   : > { %v296_v5 = vpop.trf.xlu0 }
  0xe4   : > { %762 = vmatmul.mubr.msk.f32.gmra.mrb[2].mxu0 %vm309_vm0, %v296_v5 }
  0xe7   : > { %v297_v6 = vpop.trf.xlu0 }
  0xe8   : > { %764 = vmatprep.mubr.msk.f32.mxu0 %vm309_vm0, %v297_v6 }
  0xeb   : > { %v298_v7 = vpop.trf.xlu0 }
  0xec   : > { %765 = vmatmul.mubr.msk.f32.gmra.mrb[4].mxu0 %vm309_vm0, %v298_v7 }
  0xef   : > { %v299_v8 = vpop.trf.xlu0 }
  0xf0   : > { %767 = vmatprep.mubr.msk.f32.mxu0 %vm309_vm0, %v299_v8 }
  0xf3   : > { %v300_v9 = vpop.trf.xlu0 }
  0xf4   : > { %768 = vmatmul.mubr.msk.f32.gmra.mrb[6].mxu0 %vm309_vm0, %v300_v9 }
  0xf7   : > { %v301_v10 = vpop.trf.xlu0 }
  0xf8   : > { %770 = vmatprep.mubr.msk.f32.mxu1 %vm309_vm0, %v301_v10 }
  0xfb   : > { %v302_v11 = vpop.trf.xlu0 }
  0xfc   : > { %771 = vmatmul.mubr.msk.f32.vlgmr.msra.gmra.mrb[0].mxu1 %vm309_vm0, %v302_v11 }
  0xff   : > { %v303_v12 = vpop.trf.xlu0 }
 0x100   : > { %773 = vmatprep.mubr.msk.f32.mxu1 %vm309_vm0, %v303_v12 }
 0x103   : > { %v304_v13 = vpop.trf.xlu0 }
 0x104   : > { %774 = vmatmul.mubr.msk.f32.gmra.mrb[2].mxu1 %vm309_vm0, %v304_v13 }
 0x107   : > { %v305_v14 = vpop.trf.xlu0 }
 0x108   : > { %776 = vmatprep.mubr.msk.f32.mxu1 %vm309_vm0, %v305_v14 }
 0x10b   : > { %v306_v15 = vpop.trf.xlu0 }
 0x10c   : > { %777 = vmatmul.mubr.msk.f32.gmra.mrb[4].mxu1 %vm309_vm0, %v306_v15 }
 0x10f   : > { %v307_v16 = vpop.trf.xlu0 }
 0x110   : > { %779 = vmatprep.mubr.msk.f32.mxu1 %vm309_vm0, %v307_v16 }
 0x113   : > { %v308_v17 = vpop.trf.xlu0 }
 0x114   : > { %780 = vmatmul.mubr.msk.f32.gmra.mrb[6].mxu1 %vm309_vm0, %v308_v17 }
 0x1af   : > { %v760_v18 = vpop.f32.mrb[0].mxu0 }
 0x1b0   : > { %555 = vst [vmem:[%s1206_s7 + $0x8] sm:$0xff] %v760_v18  ;;  %v424_v19 = vpop.f32.mrb[1].mxu0 }
 0x1b1   : > { %554 = vst [vmem:[%s1206_s7] sm:$0xff] %v424_v19 }
 0x1b7   : > { %v763_v20 = vpop.f32.mrb[2].mxu0 }
 0x1b8   : > { %557 = vst [vmem:[%s1206_s7 + $0x18] sm:$0xff] %v763_v20  ;;  %v434_v21 = vpop.f32.mrb[3].mxu0 }
 0x1b9   : > { %556 = vst [vmem:[%s1206_s7 + $0x10] sm:$0xff] %v434_v21 }
 0x1bf   : > { %v766_v22 = vpop.f32.mrb[4].mxu0 }
 0x1c0   : > { %559 = vst [vmem:[%s1206_s7 + $0x28] sm:$0xff] %v766_v22  ;;  %v444_v23 = vpop.f32.mrb[5].mxu0 }
 0x1c1   : > { %558 = vst [vmem:[%s1206_s7 + $0x20] sm:$0xff] %v444_v23 }
 0x1c7   : > { %v769_v24 = vpop.f32.mrb[6].mxu0 }
 0x1c8   : > { %561 = vst [vmem:[%s1206_s7 + $0x38] sm:$0xff] %v769_v24  ;;  %v454_v25 = vpop.f32.mrb[7].mxu0 }
 0x1c9   : > { %560 = vst [vmem:[%s1206_s7 + $0x30] sm:$0xff] %v454_v25 }
 0x1cf   : > { %v772_v26 = vpop.f32.mrb[0].mxu1 }
 0x1d0   : > { %563 = vst [vmem:[%s1206_s7 + $0x48] sm:$0xff] %v772_v26  ;;  %v464_v27 = vpop.f32.mrb[1].mxu1 }
 0x1d1   : > { %562 = vst [vmem:[%s1206_s7 + $0x40] sm:$0xff] %v464_v27 }
 0x1d7   : > { %v775_v28 = vpop.f32.mrb[2].mxu1 }
 0x1d8   : > { %565 = vst [vmem:[%s1206_s7 + $0x58] sm:$0xff] %v775_v28  ;;  %v474_v29 = vpop.f32.mrb[3].mxu1 }
 0x1d9   : > { %564 = vst [vmem:[%s1206_s7 + $0x50] sm:$0xff] %v474_v29 }
 0x1df   : > { %v778_v30 = vpop.f32.mrb[4].mxu1 }
 0x1e0   : > { %567 = vst [vmem:[%s1206_s7 + $0x68] sm:$0xff] %v778_v30  ;;  %v484_v31 = vpop.f32.mrb[5].mxu1 }
 0x1e1   : > { %566 = vst [vmem:[%s1206_s7 + $0x60] sm:$0xff] %v484_v31 }
 0x1e7   : > { %v781_v32 = vpop.f32.mrb[6].mxu1 }
 0x1e8   : > { %569 = vst [vmem:[%s1206_s7 + $0x78] sm:$0xff] %v781_v32  ;;  %v494_v33 = vpop.f32.mrb[7].mxu1 }
 0x1e9   : > { %568 = vst [vmem:[%s1206_s7 + $0x70] sm:$0xff] %v494_v33 }
 0x1ea   : > { %927 = shalt.err (!%p924_p2)
}
 0x1eb   : > { %s928_s8 = scalar_lea.hbm %s1227_s28, 2048  ;;  %s932_s6 = scalar_lea.hbm %s1282_s2, 4096 }
 0x1ec   : > { %p929_p9 = scmp.ne.s32.totalorder %s1227_s28, %s928_s8  ;;  %p933_p6 = scmp.lt.u32.totalorder %s1227_s28, %s1282_s2 }
 0x1ed   : > { %p934_p13 = scmp.lt.u32.totalorder %s932_s6, %s928_s8  ;;  %p936_p8 = scmp.lt.u32.totalorder %s928_s8, %s1227_s28 }
 0x1ee   : > { %p930_p11 = pnand %p929_p9, %p1295_p0 }
 0x1ef   : > { %p935_p5 = por %p934_p13, %p933_p6 }
 0x1f0   : > { %p931_p3 = pneg %p930_p11 }
 0x1f1   : > { %p937_p7 = por %p936_p8, %p935_p5 }
 0x1f3   : > { %p938_p4 = pnand %p937_p7, %p931_p3 }
 0x1f5   : > { %941 = shalt.err (!%p938_p4)
}
 0x1f6   : > { %s1005_s21 = smov 128   ;;  %s1006_s7 = smov 8  }
 0x1f7   : > { %788 = dma.vmem_to_hbm [thread:$0]  (%p1295_p0), %s1229_s30, 2048, %s1227_s28, %s571_s29, %s1005_s21, %s1005_s21, %s1006_s7  }
 0x1f8 PF: > { %s602_s19 = sand.u32 1, %s980_s9   ;;  %p1296_p10 = scmp.ne.s32.totalorder %s1288_s24, 0 }
 0x1f9   : > { %p1297_p12 = scmp.ge.s32.totalorder %s1000_s14, 2  ;;  %s603_s20 = scalar_lea.sflag [#allocation5], %s602_s19 }
 0x1fb   : > { %p798_p1 = pnand %p1297_p12, %p1296_p10 }
 0x1fd   : > { %975 = dma.done.wait (!%p798_p1), %s603_s20, 2048  }
 0x1fe   : > { %977 = vsyncadd (!%p798_p1), %s603_s20, 4294965248  ;;  %s21_s14 = sadd.s32 1, %s1000_s14   ;;  %s1298_s9 = smov %s984_s10 }
 0x1ff   : > { %p18_p2 = scmp.ge.s32.totalorder %s21_s14, 4   ;;  %s1299_s10 = smov %s988_s11 }
 0x200   : > { %s1300_s11 = smov %s1078_s23  ;;  %s1301_s12 = smov %s996_s13 }
 0x201   : > { %s1302_s13 = smov %s1304_s17  ;;  %20 = sbr.rel (!%p18_p2) target bundleno = 8 (0x8), region = 94 }
 0x208   :  { %608 = vsyncpa [#allocation4], 1 }
 0x209   :  { %610 = vsyncpa [#allocation4 + $0x1], 1 }
 0x20a   :  { %611 = vsyncpa [#allocation7], 1 }
 0x20b   :  { %613 = vsyncpa [#allocation7 + $0x1], 1 }
 0x20c   :  { %614 = vsyncpa [#allocation5], 1 }
 0x20d   :  { %616 = vsyncpa [#allocation5 + $0x1], 1 }

</bundles_post_ra>
